<compile_context>
chip_gen: v7x
topology: tpu7x:2x2x1
jax: 0.10.0
libtpu: 0.0.40
codegen_flags: <defaults>
</compile_context>

<pallas_src>
import functools

import jax
import jax.numpy as jnp
import numpy as np
from jax.experimental import pallas as pl
from jax.experimental.pallas import tpu as pltpu

EPS = 1e-5


# --------------------------------------------------------------------------------------
# Fused kernel: conv1 -> BN1(train) -> ReLU -> conv2 -> BN2(train) -> ReLU
# --------------------------------------------------------------------------------------
def double_conv_kernel(x_ref, sdn_ref, sup_ref, m1_ref, g1_ref, b1_ref,
                       m2_ref, g2_ref, b2_ref, red_ref, o_ref, *, inv_count):
    # x_ref  : (N*H, W*Cin) f32   lane-dense input slab
    # sdn/sup: (N*H, N*H)   f32   row shift-and-mask matrices (dy = -1 / +1, zero at image borders)
    # m1_ref : (3, W*Cin, W*C1) f32   banded conv1 matrices, one per ky
    # m2_ref : (3, W*C1,  W*C2) f32   banded conv2 matrices
    # g*/b*  : (1, W*C)     f32   BN gamma/beta tiled across W (lane-dense per-channel affine)
    # red_ref: (W*C, W*C)   f32   kron(ones(W,W), eye(C)): reduce-over-W + broadcast-back matrix
    # o_ref  : (N*H, W*C2)  f32   lane-dense output slab
    f32 = jnp.float32
    sdn = sdn_ref[...]
    sup = sup_ref[...]
    red = red_ref[...]

    def conv3x3(inp, m_ref):
        # dy = -1 / +1 neighbour rows via constant shift matrices (halo + image-boundary zeroing),
        # dx taps + channel mixing inside the block-banded matrices m_ref[ky].  5 small MXU matmuls.
        dn = jnp.dot(sdn, inp, preferred_element_type=f32)   # inp[y-1] (0 at y == 0)
        up = jnp.dot(sup, inp, preferred_element_type=f32)   # inp[y+1] (0 at y == H-1)
        acc = jnp.dot(dn, m_ref[0], preferred_element_type=f32)
        acc = acc + jnp.dot(inp, m_ref[1], preferred_element_type=f32)
        acc = acc + jnp.dot(up, m_ref[2], preferred_element_type=f32)
        return acc

    def bn_relu(acc, g_ref, b_ref):
        # Training-mode BN over the whole batch, fully lane-dense.
        col_sum = jnp.sum(acc, axis=0, keepdims=True)          # (1, W*C) per-column sums
        col_sqs = jnp.sum(acc * acc, axis=0, keepdims=True)
        mean = jnp.dot(col_sum, red, preferred_element_type=f32) * inv_count   # per-channel, W-broadcast
        ex2 = jnp.dot(col_sqs, red, preferred_element_type=f32) * inv_count
        var = jnp.maximum(ex2 - mean * mean, 0.0)               # biased variance (PyTorch train BN)
        scale = g_ref[...] * jax.lax.rsqrt(var + EPS)
        shift = b_ref[...] - mean * scale
        return jnp.maximum(acc * scale + shift, 0.0)

    h1 = bn_relu(conv3x3(x_ref[...], m1_ref), g1_ref, b1_ref)
    o_ref[...] = bn_relu(conv3x3(h1, m2_ref), g2_ref, b2_ref)


def _full_spec(shape):
    nd = len(shape)
    return pl.BlockSpec(shape, lambda *_: (0,) * nd)


# --------------------------------------------------------------------------------------
# Wrapper
# --------------------------------------------------------------------------------------
@jax.jit
def double_conv(x_nchw, w1, g1, b1, w2, g2, b2):
    """(Conv3x3 s1 p1 no-bias -> BN2d(train) -> ReLU) x 2.

    x: (N, Cin, H, W); w1: (C1, Cin, 3, 3); w2: (C2, C1, 3, 3); g*/b*: (C,).
    """
    N, Cin, H, W = x_nchw.shape
    C1, C2 = w1.shape[0], w2.shape[0]
    assert C1 == C2  # DoubleConv: both convs emit out_channels
    NH = N * H

    # Lane-dense input: NCHW -> NHWC -> (N*H, W*Cin).  Free relabel of the transpose output.
    x = jnp.transpose(x_nchw, (0, 2, 3, 1)).reshape(NH, W * Cin)

    # --- constant structural matrices (built once per trace, tiny) -----------------------
    # sel[kx, xp, x] = 1 iff xp == x + kx - 1 (valid dx tap); turns OIHW weights into the
    # block-banded matrices M[ky][xp*Cin + ci, x*Cout + co] = w[co, ci, ky, xp - x + 1].
    sel = np.zeros((3, W, W), np.float32)
    for kx in range(3):
        for xx in range(W):
            xp = xx + kx - 1
            if 0 <= xp < W:
                sel[kx, xp, xx] = 1.0
    sel = jnp.asarray(sel)
    m1 = jnp.einsum('kpx,oiyk->ypixo', sel, w1).reshape(3, W * Cin, W * C1)
    m2 = jnp.einsum('kpx,oiyk->ypixo', sel, w2).reshape(3, W * C1, W * C2)

    # Row shift-and-mask matrices: (S_dn @ X)[r] = X[r-1] (zero at each image's first row), etc.
    sdn = np.zeros((NH, NH), np.float32)
    sup = np.zeros((NH, NH), np.float32)
    for r in range(NH):
        if r % H != 0:
            sdn[r, r - 1] = 1.0
        if r % H != H - 1:
            sup[r, r + 1] = 1.0
    sdn = jnp.asarray(sdn)
    sup = jnp.asarray(sup)

    # BN affine tiled across W (column w*C + c -> gamma[c]) and the W-reduce/broadcast matrix.
    g1t = jnp.tile(g1[None, :], (1, W))
    b1t = jnp.tile(b1[None, :], (1, W))
    g2t = jnp.tile(g2[None, :], (1, W))
    b2t = jnp.tile(b2[None, :], (1, W))
    red = jnp.asarray(np.kron(np.ones((W, W), np.float32), np.eye(C2, dtype=np.float32)))

    kernel = functools.partial(double_conv_kernel, inv_count=1.0 / float(N * H * W))

    out = pl.pallas_call(
        kernel,
        grid=(1,),
        in_specs=[
            _full_spec(x.shape), _full_spec(sdn.shape), _full_spec(sup.shape),
            _full_spec(m1.shape), _full_spec(g1t.shape), _full_spec(b1t.shape),
            _full_spec(m2.shape), _full_spec(g2t.shape), _full_spec(b2t.shape),
            _full_spec(red.shape),
        ],
        out_specs=_full_spec((NH, W * C2)),
        out_shape=jax.ShapeDtypeStruct((NH, W * C2), jnp.float32),
        compiler_params=pltpu.CompilerParams(
            dimension_semantics=("arbitrary",),
            vmem_limit_bytes=32 * 1024 * 1024,
        ),
    )(x, sdn, sup, m1, g1t, b1t, m2, g2t, b2t, red)

    # Lane-dense (N*H, W*C2) -> NCHW (fuses with XLA's layout pass; no extra Pallas kernel).
    return jnp.transpose(out.reshape(N, H, W, C2), (0, 3, 1, 2))


# --------------------------------------------------------------------------------------
# Pure-JAX reference (f32, training-mode BatchNorm semantics)
# --------------------------------------------------------------------------------------
def ref_double_conv(x_nchw, w1, g1, b1, w2, g2, b2):
    def conv(x, w):
        return jax.lax.conv_general_dilated(
            x, w, window_strides=(1, 1), padding=((1, 1), (1, 1)),
            dimension_numbers=('NCHW', 'OIHW', 'NCHW'))

    def bn_relu(x, g, b):
        mean = x.mean(axis=(0, 2, 3), keepdims=True)
        var = x.var(axis=(0, 2, 3), keepdims=True)
        y = (x - mean) * jax.lax.rsqrt(var + EPS)
        y = y * g[None, :, None, None] + b[None, :, None, None]
        return jnp.maximum(y, 0.0)

    h = bn_relu(conv(x_nchw, w1), g1, b1)
    return bn_relu(conv(h, w2), g2, b2)


if __name__ == "__main__":
    # DoubleConv(in_channels=4, out_channels=8) on a (2, 4, 16, 16) input.
    N, Cin, Cout, H, W = 2, 4, 8, 16, 16

    key = jax.random.PRNGKey(0)
    kx, k1, k2, kg1, kb1, kg2, kb2 = jax.random.split(key, 7)

    x = jax.random.normal(kx, (N, Cin, H, W), dtype=jnp.float32)
    w1 = jax.random.normal(k1, (Cout, Cin, 3, 3), dtype=jnp.float32) * 0.1
    w2 = jax.random.normal(k2, (Cout, Cout, 3, 3), dtype=jnp.float32) * 0.1
    g1 = 1.0 + 0.1 * jax.random.normal(kg1, (Cout,), dtype=jnp.float32)
    b1 = 0.1 * jax.random.normal(kb1, (Cout,), dtype=jnp.float32)
    g2 = 1.0 + 0.1 * jax.random.normal(kg2, (Cout,), dtype=jnp.float32)
    b2 = 0.1 * jax.random.normal(kb2, (Cout,), dtype=jnp.float32)

    out = jax.block_until_ready(double_conv(x, w1, g1, b1, w2, g2, b2))

    ref = ref_double_conv(x, w1, g1, b1, w2, g2, b2)
    # All intermediates are f32 now (no bf16 casts), so the tolerance is tighter than the old 7e-2.
    np.testing.assert_allclose(np.asarray(out), np.asarray(ref), rtol=5e-2, atol=5e-2)

    print("KERNEL_OK")
</pallas_src>

<mosaic_0001>
module attributes {stable_mosaic.version = 11 : i64} {
  func.func @double_conv_kernel(%arg0: i32, %arg1: memref<32x64xf32, #tpu.memory_space<vmem>>, %arg2: memref<32x32xf32, #tpu.memory_space<vmem>>, %arg3: memref<32x32xf32, #tpu.memory_space<vmem>>, %arg4: memref<3x64x128xf32, #tpu.memory_space<vmem>>, %arg5: memref<1x128xf32, #tpu.memory_space<vmem>>, %arg6: memref<1x128xf32, #tpu.memory_space<vmem>>, %arg7: memref<3x128x128xf32, #tpu.memory_space<vmem>>, %arg8: memref<1x128xf32, #tpu.memory_space<vmem>>, %arg9: memref<1x128xf32, #tpu.memory_space<vmem>>, %arg10: memref<128x128xf32, #tpu.memory_space<vmem>>, %arg11: memref<32x128xf32, #tpu.memory_space<vmem>>) attributes {dimension_semantics = [#tpu.dimension_semantics<arbitrary>], iteration_bounds = array<i64: 1>, scalar_prefetch = 0 : i64, scratch_operands = 0 : i64, tpu.core_type = #tpu.core_type<tc>, window_params = [{pipeline_mode = #tpu.pipeline_mode<synchronous>, transform_indices = @transform_0, window_bounds = array<i64: 32, 64>}, {pipeline_mode = #tpu.pipeline_mode<synchronous>, transform_indices = @transform_1, window_bounds = array<i64: 32, 32>}, {pipeline_mode = #tpu.pipeline_mode<synchronous>, transform_indices = @transform_2, window_bounds = array<i64: 32, 32>}, {pipeline_mode = #tpu.pipeline_mode<synchronous>, transform_indices = @transform_3, window_bounds = array<i64: 3, 64, 128>}, {pipeline_mode = #tpu.pipeline_mode<synchronous>, transform_indices = @transform_4, window_bounds = array<i64: 1, 128>}, {pipeline_mode = #tpu.pipeline_mode<synchronous>, transform_indices = @transform_5, window_bounds = array<i64: 1, 128>}, {pipeline_mode = #tpu.pipeline_mode<synchronous>, transform_indices = @transform_6, window_bounds = array<i64: 3, 128, 128>}, {pipeline_mode = #tpu.pipeline_mode<synchronous>, transform_indices = @transform_7, window_bounds = array<i64: 1, 128>}, {pipeline_mode = #tpu.pipeline_mode<synchronous>, transform_indices = @transform_8, window_bounds = array<i64: 1, 128>}, {pipeline_mode = #tpu.pipeline_mode<synchronous>, transform_indices = @transform_9, window_bounds = array<i64: 128, 128>}, {pipeline_mode = #tpu.pipeline_mode<synchronous>, transform_indices = @transform_10, window_bounds = array<i64: 32, 128>}]} {
    %c0 = arith.constant 0 : index
    %c0_0 = arith.constant 0 : index
    %0 = vector.load %arg2[%c0, %c0_0] : memref<32x32xf32, #tpu.memory_space<vmem>>, vector<32x32xf32>
    %c0_1 = arith.constant 0 : index
    %c0_2 = arith.constant 0 : index
    %1 = vector.load %arg3[%c0_1, %c0_2] : memref<32x32xf32, #tpu.memory_space<vmem>>, vector<32x32xf32>
    %c0_3 = arith.constant 0 : index
    %c0_4 = arith.constant 0 : index
    %2 = vector.load %arg10[%c0_3, %c0_4] : memref<128x128xf32, #tpu.memory_space<vmem>>, vector<128x128xf32>
    %c0_5 = arith.constant 0 : index
    %c0_6 = arith.constant 0 : index
    %3 = vector.load %arg1[%c0_5, %c0_6] : memref<32x64xf32, #tpu.memory_space<vmem>>, vector<32x64xf32>
    %cst = arith.constant dense<0.000000e+00> : vector<32x64xf32>
    %4 = tpu.matmul %0, %3, %cst {dimension_numbers = #tpu.dot_dimension_numbers<[1], [0], [0], [1], [0, 0, 1, 1], [], []>} : vector<32x32xf32>, vector<32x64xf32>, vector<32x64xf32> -> vector<32x64xf32>
    %cst_7 = arith.constant dense<0.000000e+00> : vector<32x64xf32>
    %5 = tpu.matmul %1, %3, %cst_7 {dimension_numbers = #tpu.dot_dimension_numbers<[1], [0], [0], [1], [0, 0, 1, 1], [], []>} : vector<32x32xf32>, vector<32x64xf32>, vector<32x64xf32> -> vector<32x64xf32>
    %c0_8 = arith.constant 0 : index
    %c0_9 = arith.constant 0 : index
    %c0_10 = arith.constant 0 : index
    %6 = vector.load %arg4[%c0_8, %c0_9, %c0_10] : memref<3x64x128xf32, #tpu.memory_space<vmem>>, vector<1x64x128xf32>
    %7 = vector.shape_cast %6 : vector<1x64x128xf32> to vector<64x128xf32>
    %cst_11 = arith.constant dense<0.000000e+00> : vector<32x128xf32>
    %8 = tpu.matmul %4, %7, %cst_11 {dimension_numbers = #tpu.dot_dimension_numbers<[1], [0], [0], [1], [0, 0, 1, 1], [], []>} : vector<32x64xf32>, vector<64x128xf32>, vector<32x128xf32> -> vector<32x128xf32>
    %c1 = arith.constant 1 : index
    %c0_12 = arith.constant 0 : index
    %c0_13 = arith.constant 0 : index
    %9 = vector.load %arg4[%c1, %c0_12, %c0_13] : memref<3x64x128xf32, #tpu.memory_space<vmem>>, vector<1x64x128xf32>
    %10 = vector.shape_cast %9 : vector<1x64x128xf32> to vector<64x128xf32>
    %cst_14 = arith.constant dense<0.000000e+00> : vector<32x128xf32>
    %11 = tpu.matmul %3, %10, %cst_14 {dimension_numbers = #tpu.dot_dimension_numbers<[1], [0], [0], [1], [0, 0, 1, 1], [], []>} : vector<32x64xf32>, vector<64x128xf32>, vector<32x128xf32> -> vector<32x128xf32>
    %12 = arith.addf %8, %11 : vector<32x128xf32>
    %c2 = arith.constant 2 : index
    %c0_15 = arith.constant 0 : index
    %c0_16 = arith.constant 0 : index
    %13 = vector.load %arg4[%c2, %c0_15, %c0_16] : memref<3x64x128xf32, #tpu.memory_space<vmem>>, vector<1x64x128xf32>
    %14 = vector.shape_cast %13 : vector<1x64x128xf32> to vector<64x128xf32>
    %cst_17 = arith.constant dense<0.000000e+00> : vector<32x128xf32>
    %15 = tpu.matmul %5, %14, %cst_17 {dimension_numbers = #tpu.dot_dimension_numbers<[1], [0], [0], [1], [0, 0, 1, 1], [], []>} : vector<32x64xf32>, vector<64x128xf32>, vector<32x128xf32> -> vector<32x128xf32>
    %16 = arith.addf %12, %15 : vector<32x128xf32>
    %cst_18 = arith.constant dense<0.000000e+00> : vector<128xf32>
    %17 = vector.multi_reduction <add>, %16, %cst_18 [0] : vector<32x128xf32> to vector<128xf32>
    %18 = vector.shape_cast %17 : vector<128xf32> to vector<1x128xf32>
    %19 = arith.mulf %16, %16 : vector<32x128xf32>
    %cst_19 = arith.constant dense<0.000000e+00> : vector<128xf32>
    %20 = vector.multi_reduction <add>, %19, %cst_19 [0] : vector<32x128xf32> to vector<128xf32>
    %21 = vector.shape_cast %20 : vector<128xf32> to vector<1x128xf32>
    %cst_20 = arith.constant dense<0.000000e+00> : vector<1x128xf32>
    %22 = tpu.matmul %18, %2, %cst_20 {dimension_numbers = #tpu.dot_dimension_numbers<[1], [0], [0], [1], [0, 0, 1, 1], [], []>} : vector<1x128xf32>, vector<128x128xf32>, vector<1x128xf32> -> vector<1x128xf32>
    %cst_21 = arith.constant 0.001953125 : f32
    %23 = vector.broadcast %cst_21 : f32 to vector<1x128xf32>
    %24 = arith.mulf %22, %23 : vector<1x128xf32>
    %cst_22 = arith.constant dense<0.000000e+00> : vector<1x128xf32>
    %25 = tpu.matmul %21, %2, %cst_22 {dimension_numbers = #tpu.dot_dimension_numbers<[1], [0], [0], [1], [0, 0, 1, 1], [], []>} : vector<1x128xf32>, vector<128x128xf32>, vector<1x128xf32> -> vector<1x128xf32>
    %cst_23 = arith.constant 0.001953125 : f32
    %26 = vector.broadcast %cst_23 : f32 to vector<1x128xf32>
    %27 = arith.mulf %25, %26 : vector<1x128xf32>
    %28 = arith.mulf %24, %24 : vector<1x128xf32>
    %29 = arith.subf %27, %28 : vector<1x128xf32>
    %cst_24 = arith.constant 0.000000e+00 : f32
    %30 = vector.broadcast %cst_24 : f32 to vector<1x128xf32>
    %31 = arith.maximumf %29, %30 : vector<1x128xf32>
    %c0_25 = arith.constant 0 : index
    %c0_26 = arith.constant 0 : index
    %32 = vector.load %arg5[%c0_25, %c0_26] : memref<1x128xf32, #tpu.memory_space<vmem>>, vector<1x128xf32>
    %cst_27 = arith.constant 9.99999974E-6 : f32
    %33 = vector.broadcast %cst_27 : f32 to vector<1x128xf32>
    %34 = arith.addf %31, %33 : vector<1x128xf32>
    %35 = math.rsqrt %34 : vector<1x128xf32>
    %36 = arith.mulf %32, %35 : vector<1x128xf32>
    %c0_28 = arith.constant 0 : index
    %c0_29 = arith.constant 0 : index
    %37 = vector.load %arg6[%c0_28, %c0_29] : memref<1x128xf32, #tpu.memory_space<vmem>>, vector<1x128xf32>
    %38 = arith.mulf %24, %36 : vector<1x128xf32>
    %39 = arith.subf %37, %38 : vector<1x128xf32>
    %40 = vector.broadcast %36 : vector<1x128xf32> to vector<32x128xf32>
    %41 = arith.mulf %16, %40 : vector<32x128xf32>
    %42 = vector.broadcast %39 : vector<1x128xf32> to vector<32x128xf32>
    %43 = arith.addf %41, %42 : vector<32x128xf32>
    %cst_30 = arith.constant 0.000000e+00 : f32
    %44 = vector.broadcast %cst_30 : f32 to vector<32x128xf32>
    %45 = arith.maximumf %43, %44 : vector<32x128xf32>
    %cst_31 = arith.constant dense<0.000000e+00> : vector<32x128xf32>
    %46 = tpu.matmul %0, %45, %cst_31 {dimension_numbers = #tpu.dot_dimension_numbers<[1], [0], [0], [1], [0, 0, 1, 1], [], []>} : vector<32x32xf32>, vector<32x128xf32>, vector<32x128xf32> -> vector<32x128xf32>
    %cst_32 = arith.constant dense<0.000000e+00> : vector<32x128xf32>
    %47 = tpu.matmul %1, %45, %cst_32 {dimension_numbers = #tpu.dot_dimension_numbers<[1], [0], [0], [1], [0, 0, 1, 1], [], []>} : vector<32x32xf32>, vector<32x128xf32>, vector<32x128xf32> -> vector<32x128xf32>
    %c0_33 = arith.constant 0 : index
    %c0_34 = arith.constant 0 : index
    %c0_35 = arith.constant 0 : index
    %48 = vector.load %arg7[%c0_33, %c0_34, %c0_35] : memref<3x128x128xf32, #tpu.memory_space<vmem>>, vector<1x128x128xf32>
    %49 = vector.shape_cast %48 : vector<1x128x128xf32> to vector<128x128xf32>
    %cst_36 = arith.constant dense<0.000000e+00> : vector<32x128xf32>
    %50 = tpu.matmul %46, %49, %cst_36 {dimension_numbers = #tpu.dot_dimension_numbers<[1], [0], [0], [1], [0, 0, 1, 1], [], []>} : vector<32x128xf32>, vector<128x128xf32>, vector<32x128xf32> -> vector<32x128xf32>
    %c1_37 = arith.constant 1 : index
    %c0_38 = arith.constant 0 : index
    %c0_39 = arith.constant 0 : index
    %51 = vector.load %arg7[%c1_37, %c0_38, %c0_39] : memref<3x128x128xf32, #tpu.memory_space<vmem>>, vector<1x128x128xf32>
    %52 = vector.shape_cast %51 : vector<1x128x128xf32> to vector<128x128xf32>
    %cst_40 = arith.constant dense<0.000000e+00> : vector<32x128xf32>
    %53 = tpu.matmul %45, %52, %cst_40 {dimension_numbers = #tpu.dot_dimension_numbers<[1], [0], [0], [1], [0, 0, 1, 1], [], []>} : vector<32x128xf32>, vector<128x128xf32>, vector<32x128xf32> -> vector<32x128xf32>
    %54 = arith.addf %50, %53 : vector<32x128xf32>
    %c2_41 = arith.constant 2 : index
    %c0_42 = arith.constant 0 : index
    %c0_43 = arith.constant 0 : index
    %55 = vector.load %arg7[%c2_41, %c0_42, %c0_43] : memref<3x128x128xf32, #tpu.memory_space<vmem>>, vector<1x128x128xf32>
    %56 = vector.shape_cast %55 : vector<1x128x128xf32> to vector<128x128xf32>
    %cst_44 = arith.constant dense<0.000000e+00> : vector<32x128xf32>
    %57 = tpu.matmul %47, %56, %cst_44 {dimension_numbers = #tpu.dot_dimension_numbers<[1], [0], [0], [1], [0, 0, 1, 1], [], []>} : vector<32x128xf32>, vector<128x128xf32>, vector<32x128xf32> -> vector<32x128xf32>
    %58 = arith.addf %54, %57 : vector<32x128xf32>
    %cst_45 = arith.constant dense<0.000000e+00> : vector<128xf32>
    %59 = vector.multi_reduction <add>, %58, %cst_45 [0] : vector<32x128xf32> to vector<128xf32>
    %60 = vector.shape_cast %59 : vector<128xf32> to vector<1x128xf32>
    %61 = arith.mulf %58, %58 : vector<32x128xf32>
    %cst_46 = arith.constant dense<0.000000e+00> : vector<128xf32>
    %62 = vector.multi_reduction <add>, %61, %cst_46 [0] : vector<32x128xf32> to vector<128xf32>
    %63 = vector.shape_cast %62 : vector<128xf32> to vector<1x128xf32>
    %cst_47 = arith.constant dense<0.000000e+00> : vector<1x128xf32>
    %64 = tpu.matmul %60, %2, %cst_47 {dimension_numbers = #tpu.dot_dimension_numbers<[1], [0], [0], [1], [0, 0, 1, 1], [], []>} : vector<1x128xf32>, vector<128x128xf32>, vector<1x128xf32> -> vector<1x128xf32>
    %cst_48 = arith.constant 0.001953125 : f32
    %65 = vector.broadcast %cst_48 : f32 to vector<1x128xf32>
    %66 = arith.mulf %64, %65 : vector<1x128xf32>
    %cst_49 = arith.constant dense<0.000000e+00> : vector<1x128xf32>
    %67 = tpu.matmul %63, %2, %cst_49 {dimension_numbers = #tpu.dot_dimension_numbers<[1], [0], [0], [1], [0, 0, 1, 1], [], []>} : vector<1x128xf32>, vector<128x128xf32>, vector<1x128xf32> -> vector<1x128xf32>
    %cst_50 = arith.constant 0.001953125 : f32
    %68 = vector.broadcast %cst_50 : f32 to vector<1x128xf32>
    %69 = arith.mulf %67, %68 : vector<1x128xf32>
    %70 = arith.mulf %66, %66 : vector<1x128xf32>
    %71 = arith.subf %69, %70 : vector<1x128xf32>
    %cst_51 = arith.constant 0.000000e+00 : f32
    %72 = vector.broadcast %cst_51 : f32 to vector<1x128xf32>
    %73 = arith.maximumf %71, %72 : vector<1x128xf32>
    %c0_52 = arith.constant 0 : index
    %c0_53 = arith.constant 0 : index
    %74 = vector.load %arg8[%c0_52, %c0_53] : memref<1x128xf32, #tpu.memory_space<vmem>>, vector<1x128xf32>
    %cst_54 = arith.constant 9.99999974E-6 : f32
    %75 = vector.broadcast %cst_54 : f32 to vector<1x128xf32>
    %76 = arith.addf %73, %75 : vector<1x128xf32>
    %77 = math.rsqrt %76 : vector<1x128xf32>
    %78 = arith.mulf %74, %77 : vector<1x128xf32>
    %c0_55 = arith.constant 0 : index
    %c0_56 = arith.constant 0 : index
    %79 = vector.load %arg9[%c0_55, %c0_56] : memref<1x128xf32, #tpu.memory_space<vmem>>, vector<1x128xf32>
    %80 = arith.mulf %66, %78 : vector<1x128xf32>
    %81 = arith.subf %79, %80 : vector<1x128xf32>
    %82 = vector.broadcast %78 : vector<1x128xf32> to vector<32x128xf32>
    %83 = arith.mulf %58, %82 : vector<32x128xf32>
    %84 = vector.broadcast %81 : vector<1x128xf32> to vector<32x128xf32>
    %85 = arith.addf %83, %84 : vector<32x128xf32>
    %cst_57 = arith.constant 0.000000e+00 : f32
    %86 = vector.broadcast %cst_57 : f32 to vector<32x128xf32>
    %87 = arith.maximumf %85, %86 : vector<32x128xf32>
    %c0_58 = arith.constant 0 : index
    %c0_59 = arith.constant 0 : index
    %88 = vector.load %arg11[%c0_58, %c0_59] : memref<32x128xf32, #tpu.memory_space<vmem>>, vector<32x128xf32>
    tpu.vector_store %arg11[%c0_58, %c0_59], %87 {strides = array<i32>} : memref<32x128xf32, #tpu.memory_space<vmem>>, vector<32x128xf32>,
    return
  }
  func.func @transform_0(%arg0: i32) -> (i32, i32) {
    %c0_i32 = arith.constant 0 : i32
    %c0_i32_0 = arith.constant 0 : i32
    %c0_i32_1 = arith.constant 0 : i32
    return %c0_i32, %c0_i32_0 : i32, i32
  }
  func.func @transform_1(%arg0: i32) -> (i32, i32) {
    %c0_i32 = arith.constant 0 : i32
    %c0_i32_0 = arith.constant 0 : i32
    %c0_i32_1 = arith.constant 0 : i32
    return %c0_i32, %c0_i32_0 : i32, i32
  }
  func.func @transform_2(%arg0: i32) -> (i32, i32) {
    %c0_i32 = arith.constant 0 : i32
    %c0_i32_0 = arith.constant 0 : i32
    %c0_i32_1 = arith.constant 0 : i32
    return %c0_i32, %c0_i32_0 : i32, i32
  }
  func.func @transform_3(%arg0: i32) -> (i32, i32, i32) {
    %c0_i32 = arith.constant 0 : i32
    %c0_i32_0 = arith.constant 0 : i32
    %c0_i32_1 = arith.constant 0 : i32
    %c0_i32_2 = arith.constant 0 : i32
    return %c0_i32, %c0_i32_0, %c0_i32_1 : i32, i32, i32
  }
  func.func @transform_4(%arg0: i32) -> (i32, i32) {
    %c0_i32 = arith.constant 0 : i32
    %c0_i32_0 = arith.constant 0 : i32
    %c0_i32_1 = arith.constant 0 : i32
    return %c0_i32, %c0_i32_0 : i32, i32
  }
  func.func @transform_5(%arg0: i32) -> (i32, i32) {
    %c0_i32 = arith.constant 0 : i32
    %c0_i32_0 = arith.constant 0 : i32
    %c0_i32_1 = arith.constant 0 : i32
    return %c0_i32, %c0_i32_0 : i32, i32
  }
  func.func @transform_6(%arg0: i32) -> (i32, i32, i32) {
    %c0_i32 = arith.constant 0 : i32
    %c0_i32_0 = arith.constant 0 : i32
    %c0_i32_1 = arith.constant 0 : i32
    %c0_i32_2 = arith.constant 0 : i32
    return %c0_i32, %c0_i32_0, %c0_i32_1 : i32, i32, i32
  }
  func.func @transform_7(%arg0: i32) -> (i32, i32) {
    %c0_i32 = arith.constant 0 : i32
    %c0_i32_0 = arith.constant 0 : i32
    %c0_i32_1 = arith.constant 0 : i32
    return %c0_i32, %c0_i32_0 : i32, i32
  }
  func.func @transform_8(%arg0: i32) -> (i32, i32) {
    %c0_i32 = arith.constant 0 : i32
    %c0_i32_0 = arith.constant 0 : i32
    %c0_i32_1 = arith.constant 0 : i32
    return %c0_i32, %c0_i32_0 : i32, i32
  }
  func.func @transform_9(%arg0: i32) -> (i32, i32) {
    %c0_i32 = arith.constant 0 : i32
    %c0_i32_0 = arith.constant 0 : i32
    %c0_i32_1 = arith.constant 0 : i32
    return %c0_i32, %c0_i32_0 : i32, i32
  }
  func.func @transform_10(%arg0: i32) -> (i32, i32) {
    %c0_i32 = arith.constant 0 : i32
    %c0_i32_0 = arith.constant 0 : i32
    %c0_i32_1 = arith.constant 0 : i32
    return %c0_i32, %c0_i32_0 : i32, i32
  }
}

</mosaic_0001>

<bundles_post_ra>
// kernel: double_conv.1
= control target key start
LH: loop header
LB: loop body
LE: loop exit
PB: predicated region body
PF: predicated region fallthrough
CT: control target
= control target key end

     0   :  { %vm63_vm0 = vcmask 261120   ;;  %vm275_vm1 = vcmask 523264   ;;  %v2406_v41 = vmov 0.0|0.0   ;;  %vm2407_vm2 = vmmov 0   ;;  %s3009_s0 = inlined_call_operand.vmem [shape: f32[32,64], index: 0, kind: input, shape index: {}]   ;;  %s3010_s1 = inlined_call_operand.vmem [shape: f32[32,32], index: 1, kind: input, shape index: {}]   ;;  %s3011_s2 = inlined_call_operand.vmem [shape: f32[32,32], index: 2, kind: input, shape index: {}]   ;;  %s3012_s3 = inlined_call_operand.vmem [shape: f32[3,64,128], index: 3, kind: input, shape index: {}]   ;;  %s3013_s9 = inlined_call_operand.vmem [shape: f32[128,128], index: 9, kind: input, shape index: {}]   ;;  %s3014_s4 = inlined_call_operand.vmem [shape: f32[1,128], index: 4, kind: input, shape index: {}]   ;;  %s3015_s5 = inlined_call_operand.vmem [shape: f32[1,128], index: 5, kind: input, shape index: {}]   ;;  %s3016_s6 = inlined_call_operand.vmem [shape: f32[3,128,128], index: 6, kind: input, shape index: {}]   ;;  %s3017_s7 = inlined_call_operand.vmem [shape: f32[1,128], index: 7, kind: input, shape index: {}]   ;;  %s3018_s8 = inlined_call_operand.vmem [shape: f32[1,128], index: 8, kind: input, shape index: {}]   ;;  %s3019_s10 = inlined_call_operand.vmem [shape: f32[32,128], index: 10, kind: output, shape index: {}]  }
   0x1   :  { %v2467_v0 = vld [vmem:[%s3009_s0] sm:$0xff]  ;;  %v2472_v1 = vld [vmem:[%s3009_s0 + $0x8] sm:$0xff]  ;;  %v2477_v2 = vld [vmem:[%s3009_s0 + $0x10] sm:$0xff] }
   0x2   :  { %v2111_v3 = vpack.c.bf16 %v2472_v1, %v2467_v0  ;;  %v2484_v4 = vld [vmem:[%s3009_s0 + $0x18] sm:$0xff]  ;;  %v2489_v5 = vld [vmem:[%s3010_s1] sm:$0xff]  ;;  %v259_v9 = vld [vmem:[%s3012_s3 + $0x8] sm:$0xff] }
   0x3   :  { %v2115_v6 = vpack.c.bf16 %v2484_v4, %v2477_v2  ;;  %1743 = vmatprep.mubr.msk.f32.mxu0 %vm63_vm0, %v2489_v5  ;;  %v2498_v7 = vld [vmem:[%s3011_s2] sm:$0xff]  ;;  %v260_v11 = vld [vmem:[%s3012_s3 + $0x10] sm:$0xff]  ;;  %v261_v12 = vld [vmem:[%s3012_s3 + $0x18] sm:$0xff] }
   0x4   :  { %2112 = vmatprep.subr.bf16.mxu0 %v2111_v3  ;;  %2120 = vmatprep.subr.bf16.mxu1 %v2111_v3  ;;  %v258_v8 = vld [vmem:[%s3012_s3] sm:$0xff]  ;;  %v2517_v13 = vld [vmem:[%s3010_s1 + $0x8] sm:$0xff]  ;;  %v2527_v15 = vld [vmem:[%s3010_s1 + $0x10] sm:$0xff]  ;;  %v2147_v17 = vpack.c.bf16 %v261_v12, %v260_v11 }
   0x5   :  { %2114 = vmatpush3.bf16.msra.mxu0 %v2111_v3  ;;  %2122 = vmatpush3.bf16.msra.mxu1 %v2111_v3  ;;  %v2143_v10 = vpack.c.bf16 %v259_v9, %v258_v8  ;;  %v2522_v14 = vld [vmem:[%s3011_s2 + $0x8] sm:$0xff]  ;;  %v2532_v16 = vld [vmem:[%s3011_s2 + $0x10] sm:$0xff]  ;;  %v262_v18 = vld [vmem:[%s3012_s3 + $0x20] sm:$0xff] }
   0x6   :  { %2116 = vmatprep.subr.bf16.mxu0 %v2115_v6  ;;  %2124 = vmatprep.subr.bf16.mxu1 %v2115_v6  ;;  %v263_v19 = vld [vmem:[%s3012_s3 + $0x28] sm:$0xff]  ;;  %v2549_v20 = vld [vmem:[%s3010_s1 + $0x18] sm:$0xff]  ;;  %v264_v23 = vld [vmem:[%s3012_s3 + $0x30] sm:$0xff] }
   0x7   :  { %1757 = vmatprep.mubr.msk.f32.mxu1 %vm63_vm0, %v2498_v7  ;;  %v2556_v21 = vld [vmem:[%s3011_s2 + $0x18] sm:$0xff]  ;;  %v2151_v22 = vpack.c.bf16 %v263_v19, %v262_v18  ;;  %v1471_v26 = vld [vmem:[%s3012_s3 + $0x40] sm:$0xff]  ;;  %v1472_v27 = vld [vmem:[%s3012_s3 + $0x48] sm:$0xff] }
   0x8   :  { %v265_v24 = vld [vmem:[%s3012_s3 + $0x38] sm:$0xff]  ;;  %v2127_v28 = vpack.c.bf16 %v1472_v27, %v1471_v26  ;;  %v1487_v29 = vld [vmem:[%s3012_s3 + $0x80] sm:$0xff]  ;;  %v1488_v30 = vld [vmem:[%s3012_s3 + $0x88] sm:$0xff] }
   0x9   :  { %2118 = vmatpush3.bf16.msra.mxu0 %v2115_v6  ;;  %2126 = vmatpush3.bf16.msra.mxu1 %v2115_v6  ;;  %v2155_v25 = vpack.c.bf16 %v265_v24, %v264_v23  ;;  %v2159_v31 = vpack.c.bf16 %v1488_v30, %v1487_v29  ;;  %v1473_v32 = vld [vmem:[%s3012_s3 + $0x50] sm:$0xff]  ;;  %v1474_v33 = vld [vmem:[%s3012_s3 + $0x58] sm:$0xff]  ;;  %v1475_v35 = vld [vmem:[%s3012_s3 + $0x60] sm:$0xff]  ;;  %v2408_v30 = vmov 0.0  }
   0xa   :  { %2144 = vmatprep.subr.bf16.mxu0 %v2143_v10  ;;  %2128 = vmatprep.subr.bf16.mxu1 %v2127_v28  ;;  %v2131_v34 = vpack.c.bf16 %v1474_v33, %v1473_v32  ;;  %v1476_v36 = vld [vmem:[%s3012_s3 + $0x68] sm:$0xff]  ;;  %v1477_v38 = vld [vmem:[%s3012_s3 + $0x70] sm:$0xff]  ;;  %v1478_v39 = vld [vmem:[%s3012_s3 + $0x78] sm:$0xff] }
   0xb   :  { %v2135_v37 = vpack.c.bf16 %v1476_v36, %v1475_v35  ;;  %v2139_v40 = vpack.c.bf16 %v1478_v39, %v1477_v38  ;;  %v43_v42 = vld [vmem:[%s3013_s9] sm:$0xff]  ;;  %v44_v43 = vld [vmem:[%s3013_s9 + $0x8] sm:$0xff]  ;;  %v45_v44 = vld [vmem:[%s3013_s9 + $0x10] sm:$0xff] }
   0xc   :  { %1744 = vmatmul.mubr.msk.f32.vlgmr.msra.gmra.mrb[0].mxu0 %vm63_vm0, %v2517_v13  ;;  %1758 = vmatmul.mubr.msk.f32.vlgmr.msra.gmra.mrb[0].mxu1 %vm63_vm0, %v2522_v14  ;;  %v2616_v45 = vpack.c.bf16 %v44_v43, %v43_v42  ;;  %v46_v46 = vld [vmem:[%s3013_s9 + $0x18] sm:$0xff]  ;;  %v1489_v48 = vld [vmem:[%s3012_s3 + $0x90] sm:$0xff]  ;;  %v1491_v55 = vld [vmem:[%s3012_s3 + $0xa0] sm:$0xff] }
   0xd   :  { %1746 = vmatprep.mubr.msk.f32.mxu0 %vm63_vm0, %v2527_v15  ;;  %1760 = vmatprep.mubr.msk.f32.mxu1 %vm63_vm0, %v2532_v16  ;;  %v2622_v47 = vpack.c.bf16 %v46_v46, %v45_v44  ;;  %v1490_v49 = vld [vmem:[%s3012_s3 + $0x98] sm:$0xff]  ;;  %v1492_v56 = vld [vmem:[%s3012_s3 + $0xa8] sm:$0xff]  ;;  %v1493_v62 = vld [vmem:[%s3012_s3 + $0xb0] sm:$0xff] }
   0xe   :  { %2146 = vmatpush3.bf16.msra.mxu0 %v2143_v10  ;;  %2130 = vmatpush3.bf16.msra.mxu1 %v2127_v28  ;;  %v2163_v53 = vpack.c.bf16 %v1490_v49, %v1489_v48  ;;  %v2167_v60 = vpack.c.bf16 %v1492_v56, %v1491_v55  ;;  %v1494_v63 = vld [vmem:[%s3012_s3 + $0xb8] sm:$0xff]  ;;  %v51_v12 = vld [vmem:[%s3013_s9 + $0x40] sm:$0xff]  ;;  %v53_v19 = vld [vmem:[%s3013_s9 + $0x50] sm:$0xff] }
   0xf   :  { %2148 = vmatprep.subr.bf16.mxu0 %v2147_v17  ;;  %2132 = vmatprep.subr.bf16.mxu1 %v2131_v34  ;;  %v50_v8 = vld [vmem:[%s3013_s9 + $0x38] sm:$0xff]  ;;  %v55_v24 = vld [vmem:[%s3013_s9 + $0x60] sm:$0xff]  ;;  %v57_v27 = vld [vmem:[%s3013_s9 + $0x70] sm:$0xff] }
  0x10   :  { %1747 = vmatmul.mubr.msk.f32.gmra.mrb[2].mxu0 %vm63_vm0, %v2549_v20  ;;  %1761 = vmatmul.mubr.msk.f32.gmra.mrb[2].mxu1 %vm63_vm0, %v2556_v21  ;;  %v58_v28 = vld [vmem:[%s3013_s9 + $0x78] sm:$0xff] }
  0x11   :  { %1779 = vmatprep.mubr.msk.f32.mxu1 %vm275_vm1, %v2467_v0  ;;  %v2171_v0 = vpack.c.bf16 %v1494_v63, %v1493_v62  ;;  %v2711_v29 = vpack.c.bf16 %v58_v28, %v57_v27  ;;  %v751_v28 = vld [vmem:[%s3015_s5] sm:$0x1] }
  0x12   :  { %2150 = vmatpush3.bf16.msra.mxu0 %v2147_v17  ;;  %2134 = vmatpush3.bf16.msra.mxu1 %v2131_v34  ;;  %v52_v17 = vld [vmem:[%s3013_s9 + $0x48] sm:$0xff] }
  0x13   :  { %2152 = vmatprep.subr.bf16.mxu0 %v2151_v22  ;;  %2136 = vmatprep.subr.bf16.mxu1 %v2135_v37  ;;  %v2681_v18 = vpack.c.bf16 %v52_v17, %v51_v12  ;;  %v755_v17 = vlaneseq }
  0x16   :  { %2154 = vmatpush3.bf16.msra.mxu0 %v2151_v22  ;;  %2138 = vmatpush3.bf16.msra.mxu1 %v2135_v37  ;;  %v54_v22 = vld [vmem:[%s3013_s9 + $0x58] sm:$0xff] }
  0x17   :  { %2156 = vmatprep.subr.bf16.mxu0 %v2155_v25  ;;  %2140 = vmatprep.subr.bf16.mxu1 %v2139_v40  ;;  %v2691_v23 = vpack.c.bf16 %v54_v22, %v53_v19  ;;  %v756_v19 = vshrl.u32 %v755_v17, 7  ;;  %v747_v22 = vld [vmem:[%s3014_s4] sm:$0x1] }
  0x1a   :  { %2158 = vmatpush3.bf16.msra.mxu0 %v2155_v25  ;;  %2142 = vmatpush3.bf16.msra.mxu1 %v2139_v40  ;;  %v56_v25 = vld [vmem:[%s3013_s9 + $0x68] sm:$0xff] }
  0x1b   :  { %2160 = vmatprep.subr.bf16.mxu0 %v2159_v31  ;;  %2175 = vmatprep.subr.bf16.mxu1 %v2406_v41  ;;  %v2701_v26 = vpack.c.bf16 %v56_v25, %v55_v24  ;;  %v2776_v24 = vsub.s32 0, %v756_v19  ;;  %v952_v19 = vld [vmem:[%s3016_s6 + $0x20] sm:$0xff] }
  0x1d   :  { %1780 = vmatmul.mubr.msk.f32.vlgmr.msra.gmra.mrb[4].mxu1 %vm275_vm1, %v2472_v1  ;;  %v47_v1 = vld [vmem:[%s3013_s9 + $0x20] sm:$0xff] }
  0x1e   :  { %1782 = vmatprep.mubr.msk.f32.mxu1 %vm275_vm1, %v2477_v2  ;;  %2177 = vmatpush3.bf16.msra.mxu1 %v2616_v45  ;;  %v48_v2 = vld [vmem:[%s3013_s9 + $0x28] sm:$0xff] }
  0x1f   :  { %2178 = vmatprep.subr.bf16.mxu1 %v2406_v41  ;;  %v2661_v3 = vpack.c.bf16 %v48_v2, %v47_v1 }
  0x21   :  { %1783 = vmatmul.mubr.msk.f32.gmra.mrb[6].mxu1 %vm275_vm1, %v2484_v4 }
  0x22   :  { %2180 = vmatpush3.bf16.msra.mxu1 %v2622_v47  ;;  %1861 = vmatprep.mubr.msk.f32.mxu1 %vm2407_vm2, %v2408_v30 }
  0x23   :  { %2181 = vmatprep.subr.bf16.mxu1 %v2406_v41 }
  0x26   :  { %2183 = vmatpush3.bf16.msra.mxu1 %v2661_v3 }
  0x27   :  { %2184 = vmatprep.subr.bf16.mxu1 %v2406_v41 }
  0xdf   :  { %v1745_v50 = vpop.f32.mrb[0].mxu0  ;;  %v1759_v51 = vpop.f32.mrb[0].mxu1 }
  0xe0   :  { %v142_v52 = vpop.f32.mrb[1].mxu0  ;;  %v239_v54 = vpop.f32.mrb[1].mxu1 }
  0xe1   :  { %1801 = vmatprep.mubr.msk.f32.mxu0 %vm275_vm1, %v142_v52 }
  0xe2   :  { %1802 = vmatmul.mubr.msk.f32.vlgmr.msra.gmra.mrb[4].mxu0 %vm275_vm1, %v1745_v50 }
  0xe3   :  { %2162 = vmatpush3.bf16.msra.mxu0 %v2159_v31  ;;  %v1748_v57 = vpop.f32.mrb[2].mxu0  ;;  %v1762_v58 = vpop.f32.mrb[2].mxu1 }
  0xe4   :  { %2164 = vmatprep.subr.bf16.mxu0 %v2163_v53  ;;  %v152_v59 = vpop.f32.mrb[3].mxu0  ;;  %v249_v61 = vpop.f32.mrb[3].mxu1 }
  0xe5   :  { %1804 = vmatprep.mubr.msk.f32.mxu0 %vm275_vm1, %v152_v59 }
  0xe6   :  { %1805 = vmatmul.mubr.msk.f32.gmra.mrb[6].mxu0 %vm275_vm1, %v1748_v57 }
  0xe7   :  { %2166 = vmatpush3.bf16.msra.mxu0 %v2163_v53  ;;  %1823 = vmatprep.mubr.msk.f32.mxu0 %vm275_vm1, %v239_v54 }
  0xe8   :  { %2168 = vmatprep.subr.bf16.mxu0 %v2167_v60 }
  0xeb   :  { %2170 = vmatpush3.bf16.msra.mxu0 %v2167_v60 }
  0xec   :  { %2172 = vmatprep.subr.bf16.mxu0 %v2171_v0 }
  0xef   :  { %2174 = vmatpush3.bf16.msra.mxu0 %v2171_v0 }
  0xf0   :  { %v1781_v4 = vpop.f32.mrb[4].mxu1 }
  0xf1   :  { %v354_v6 = vpop.f32.mrb[5].mxu1 }
  0xf2   :  { %1824 = vmatmul.mubr.msk.f32.vlgmr.msra.gmra.mrb[4].mxu0 %vm275_vm1, %v1759_v51 }
  0xf3   :  { %1826 = vmatprep.mubr.msk.f32.mxu0 %vm275_vm1, %v249_v61 }
  0xf4   :  { %v1784_v10 = vpop.f32.mrb[6].mxu1 }
  0xf5   :  { %v364_v11 = vpop.f32.mrb[7].mxu1 }
  0xf6   :  { %1827 = vmatmul.mubr.msk.f32.gmra.mrb[6].mxu0 %vm275_vm1, %v1762_v58 }
  0xf7   :  { %1907 = vmatprep.mubr.msk.f32.mxu0 %vm63_vm0, %v2489_v5  ;;  %v49_v5 = vld [vmem:[%s3013_s9 + $0x30] sm:$0xff] }
  0xf8   :  { %v2671_v9 = vpack.c.bf16 %v50_v8, %v49_v5 }
  0xfa   :  { %2186 = vmatpush3.bf16.msra.mxu1 %v2671_v9 }
  0xfb   :  { %2187 = vmatprep.subr.bf16.mxu1 %v2406_v41 }
  0xfe   :  { %2189 = vmatpush3.bf16.msra.mxu1 %v2681_v18 }
  0xff   :  { %2190 = vmatprep.subr.bf16.mxu1 %v2406_v41 }
 0x102   :  { %2192 = vmatpush3.bf16.msra.mxu1 %v2691_v23 }
 0x103   :  { %2193 = vmatprep.subr.bf16.mxu1 %v2406_v41 }
 0x106   :  { %2195 = vmatpush3.bf16.msra.mxu1 %v2701_v26 }
 0x107   :  { %2196 = vmatprep.subr.bf16.mxu1 %v2406_v41 }
 0x10a   :  { %2198 = vmatpush3.bf16.msra.mxu1 %v2711_v29 }
 0x10b   :  { %2199 = vmatprep.subr.bf16.mxu1 %v2406_v41 }
 0x1c5   :  { %v1825_v31 = vpop.f32.mrb[4].mxu0 }
 0x1c6   :  { %v2717_v32 = vadd.f32 %v1825_v31, %v1781_v4  ;;  %v557_v33 = vpop.f32.mrb[5].mxu0 }
 0x1c7   :  { %v2719_v34 = vadd.f32 %v557_v33, %v354_v6 }
 0x1c8   :  { %v590_v49 = vmul.f32 %v2717_v32, %v2717_v32 }
 0x1c9   :  { %v1828_v35 = vpop.f32.mrb[6].mxu0  ;;  %v580_v38 = vadd.f32 %v2719_v34, %v2717_v32  ;;  %v589_v50 = vmul.f32 %v2719_v34, %v2719_v34 }
 0x1ca   :  { %v2721_v36 = vadd.f32 %v1828_v35, %v1784_v10  ;;  %v567_v37 = vpop.f32.mrb[7].mxu0 }
 0x1cb   :  { %v2725_v39 = vadd.f32 %v567_v37, %v364_v11  ;;  %v593_v54 = vadd.f32 %v590_v49, %v589_v50 }
 0x1cc   :  { %v592_v56 = vmul.f32 %v2721_v36, %v2721_v36 }
 0x1cd   :  { %v581_v40 = vadd.f32 %v2725_v39, %v580_v38  ;;  %v591_v52 = vmul.f32 %v2725_v39, %v2725_v39 }
 0x1cf   :  { %v582_v42 = vadd.f32 %v2721_v36, %v581_v40  ;;  %v594_v55 = vadd.f32 %v593_v54, %v591_v52 }
 0x1d1   :  { %v583_v43 = vrot.slane %v582_v42, 4  ;;  %v595_v57 = vadd.f32 %v594_v55, %v592_v56  ;;  %v1509_v55 = vld [vmem:[%s3016_s6 + $0x90] sm:$0xff]  ;;  %v1510_v56 = vld [vmem:[%s3016_s6 + $0x98] sm:$0xff] }
 0x1d3   :  { %v584_v44 = vadd.f32 %v583_v43, %v582_v42  ;;  %v596_v58 = vrot.slane %v595_v57, 4 }
 0x1d5   :  { %v585_v46 = vrot.slane %v584_v44, 2  ;;  %v597_v59 = vadd.f32 %v596_v58, %v595_v57  ;;  %v1512_v57 = vld [vmem:[%s3016_s6 + $0xa8] sm:$0xff]  ;;  %v1514_v58 = vld [vmem:[%s3016_s6 + $0xb8] sm:$0xff] }
 0x1d7   :  { %v586_v48 = vadd.f32 %v585_v46, %v584_v44  ;;  %v598_v60 = vrot.slane %v597_v59, 2 }
 0x1d9   :  { %v587_v51 = vrot.slane %v586_v48, 1  ;;  %v599_v61 = vadd.f32 %v598_v60, %v597_v59  ;;  %v1516_v59 = vld [vmem:[%s3016_s6 + $0xc8] sm:$0xff] }
 0x1db   :  { %v588_v53 = vadd.f32 %v587_v51, %v586_v48  ;;  %v600_v62 = vrot.slane %v599_v61, 1 }
 0x1dd   :  { %1862 = vmatmul.mubr.f32.vlgmr.msra.gmra.mrb[8].mxu1 %v588_v53  ;;  %v601_v63 = vadd.f32 %v600_v62, %v599_v61  ;;  %v1508_v53 = vld [vmem:[%s3016_s6 + $0x88] sm:$0xff]  ;;  %v1517_v61 = vld [vmem:[%s3016_s6 + $0xd0] sm:$0xff] }
 0x1de   :  { %2201 = vmatpush3.bf16.msra.mxu1 %v2616_v45  ;;  %1896 = vmatprep.mubr.msk.f32.mxu1 %vm2407_vm2, %v2408_v30 }
 0x1df   :  { %2202 = vmatprep.subr.bf16.mxu1 %v2406_v41 }
 0x1e2   :  { %2204 = vmatpush3.bf16.msra.mxu1 %v2622_v47 }
 0x1e3   :  { %2205 = vmatprep.subr.bf16.mxu1 %v2406_v41 }
 0x1e6   :  { %2207 = vmatpush3.bf16.msra.mxu1 %v2661_v3 }
 0x1e7   :  { %2208 = vmatprep.subr.bf16.mxu1 %v2406_v41 }
 0x1ea   :  { %2210 = vmatpush3.bf16.msra.mxu1 %v2671_v9 }
 0x1eb   :  { %2211 = vmatprep.subr.bf16.mxu1 %v2406_v41 }
 0x1ee   :  { %2213 = vmatpush3.bf16.msra.mxu1 %v2681_v18 }
 0x1ef   :  { %2214 = vmatprep.subr.bf16.mxu1 %v2406_v41 }
 0x1f2   :  { %2216 = vmatpush3.bf16.msra.mxu1 %v2691_v23 }
 0x1f3   :  { %2217 = vmatprep.subr.bf16.mxu1 %v2406_v41 }
 0x1f6   :  { %2219 = vmatpush3.bf16.msra.mxu1 %v2701_v26 }
 0x1f7   :  { %2220 = vmatprep.subr.bf16.mxu1 %v2406_v41 }
 0x1fa   :  { %2222 = vmatpush3.bf16.msra.mxu1 %v2711_v29 }
 0x1fb   :  { %2335 = vmatprep.subr.bf16.mxu1 %v2406_v41 }
 0x1fd   :  { %1897 = vmatmul.mubr.f32.vlgmr.msra.gmra.mrb[10].mxu1 %v601_v63  ;;  %v1519_v63 = vld [vmem:[%s3016_s6 + $0xe0] sm:$0xff] }
 0x1fe   :  { %2337 = vmatpush3.bf16.msra.mxu1 %v2616_v45  ;;  %2073 = vmatprep.mubr.msk.f32.mxu1 %vm2407_vm2, %v2408_v30 }
 0x1ff   :  { %2338 = vmatprep.subr.bf16.mxu1 %v2406_v41 }
 0x202   :  { %2340 = vmatpush3.bf16.msra.mxu1 %v2622_v47 }
 0x203   :  { %2341 = vmatprep.subr.bf16.mxu1 %v2406_v41 }
 0x206   :  { %2343 = vmatpush3.bf16.msra.mxu1 %v2661_v3 }
 0x207   :  { %2344 = vmatprep.subr.bf16.mxu1 %v2406_v41 }
 0x20a   :  { %2346 = vmatpush3.bf16.msra.mxu1 %v2671_v9 }
 0x20b   :  { %2347 = vmatprep.subr.bf16.mxu1 %v2406_v41 }
 0x20e   :  { %2349 = vmatpush3.bf16.msra.mxu1 %v2681_v18 }
 0x20f   :  { %2350 = vmatprep.subr.bf16.mxu1 %v2406_v41 }
 0x212   :  { %2352 = vmatpush3.bf16.msra.mxu1 %v2691_v23 }
 0x213   :  { %2353 = vmatprep.subr.bf16.mxu1 %v2406_v41 }
 0x216   :  { %2355 = vmatpush3.bf16.msra.mxu1 %v2701_v26 }
 0x217   :  { %2356 = vmatprep.subr.bf16.mxu1 %v2406_v41 }
 0x21a   :  { %2358 = vmatpush3.bf16.msra.mxu1 %v2711_v29 }
 0x21b   :  { %2359 = vmatprep.subr.bf16.mxu1 %v2406_v41 }
 0x2b0   :  { %v668_v0 = vpop.f32.mrb[8].mxu1 }
 0x2b1   :  { %v1863_v1 = vpop.f32.mrb[9].mxu1  ;;  %v672_v2 = vmul.f32 0.001953125, %v668_v0  ;;  %v1520_v0 = vld [vmem:[%s3016_s6 + $0xe8] sm:$0xff] }
 0x2b2   :  { %v2263_v1 = vpack.c.bf16 %v1520_v0, %v1519_v63  ;;  %v1533_v63 = vld [vmem:[%s3016_s6 + $0x150] sm:$0xff]  ;;  %v1534_v0 = vld [vmem:[%s3016_s6 + $0x158] sm:$0xff] }
 0x2b3   :  { %v744_v6 = vmul.f32 %v672_v2, %v672_v2 }
 0x2d0   :  { %v739_v4 = vpop.f32.mrb[10].mxu1 }
 0x2d1   :  { %v743_v5 = vmul.f32 0.001953125, %v739_v4  ;;  %v1898_v8 = vpop.f32.mrb[11].mxu1  ;;  %v1522_v4 = vld [vmem:[%s3016_s6 + $0xf8] sm:$0xff] }
 0x2d2   :  { %v949_v8 = vld [vmem:[%s3016_s6 + $0x8] sm:$0xff] }
 0x2d3   :  { %v745_v10 = vsub.f32 %v743_v5, %v744_v6  ;;  %v948_v5 = vld [vmem:[%s3016_s6] sm:$0xff] }
 0x2d5   :  { %v746_v11 = vmax.f32 %v745_v10, 0.0  ;;  %v2271_v10 = vpack.c.bf16 %v949_v8, %v948_v5  ;;  %v1537_v5 = vld [vmem:[%s3016_s6 + $0x170] sm:$0xff]  ;;  %v1538_v8 = vld [vmem:[%s3016_s6 + $0x178] sm:$0xff] }
 0x2d7   :  { %v748_v12 = vadd.f32 1e-05, %v746_v11  ;;  %v950_v11 = vld [vmem:[%s3016_s6 + $0x10] sm:$0xff] }
 0x2d9   :  { %2402 = vrsqrt.f32 %v748_v12  ;;  %v951_v12 = vld [vmem:[%s3016_s6 + $0x18] sm:$0xff] }
 0x2da   :  { %v2275_v17 = vpack.c.bf16 %v951_v12, %v950_v11 }
 0x2e3   :  { %v2403_v25 = vpop.eup %2402 }
 0x2e4   :  { %v750_v27 = vmul.f32 %v2403_v25, %v747_v22  ;;  %v953_v22 = vld [vmem:[%s3016_s6 + $0x28] sm:$0xff] }
 0x2e5   :  { %v2279_v25 = vpack.c.bf16 %v953_v22, %v952_v19 }
 0x2e6   :  { %v752_v31 = vmul.f32 %v750_v27, %v672_v2  ;;  %v758_v33 = vrot.slane %v750_v27, %v2776_v24  ;;  %v1521_v2 = vld [vmem:[%s3016_s6 + $0xf0] sm:$0xff] }
 0x2e7   :  { %v2267_v6 = vpack.c.bf16 %v1522_v4, %v1521_v2  ;;  %v954_v27 = vld [vmem:[%s3016_s6 + $0x30] sm:$0xff]  ;;  %v1535_v2 = vld [vmem:[%s3016_s6 + $0x160] sm:$0xff]  ;;  %v1536_v4 = vld [vmem:[%s3016_s6 + $0x168] sm:$0xff] }
 0x2e8   :  { %v753_v35 = vsub.f32 %v751_v28, %v752_v31  ;;  %v760_v37 = vmul.f32 %v2719_v34, %v758_v33  ;;  %v761_v38 = vmul.f32 %v2717_v32, %v758_v33  ;;  %v762_v42 = vmul.f32 %v2725_v39, %v758_v33  ;;  %v1507_v39 = vld [vmem:[%s3016_s6 + $0x80] sm:$0xff]  ;;  %v955_v28 = vld [vmem:[%s3016_s6 + $0x38] sm:$0xff] }
 0x2e9   :  { %v763_v43 = vmul.f32 %v2721_v36, %v758_v33  ;;  %v2239_v54 = vpack.c.bf16 %v1508_v53, %v1507_v39  ;;  %v2283_v31 = vpack.c.bf16 %v955_v28, %v954_v27  ;;  %v956_v33 = vld [vmem:[%s3016_s6 + $0x40] sm:$0xff] }
 0x2ea   :  { %v768_v40 = vrot.slane %v753_v35, %v2776_v24  ;;  %v957_v35 = vld [vmem:[%s3016_s6 + $0x48] sm:$0xff] }
 0x2ec   :  { %v770_v44 = vadd.f32 %v768_v40, %v760_v37  ;;  %v2787_v46 = vadd.f32 %v768_v40, %v761_v38  ;;  %v2789_v48 = vadd.f32 %v768_v40, %v762_v42  ;;  %v2791_v49 = vadd.f32 %v768_v40, %v763_v43  ;;  %v958_v38 = vld [vmem:[%s3016_s6 + $0x50] sm:$0xff]  ;;  %v959_v40 = vld [vmem:[%s3016_s6 + $0x58] sm:$0xff]  ;;  %v960_v43 = vld [vmem:[%s3016_s6 + $0x60] sm:$0xff] }
 0x2ed   :  { %v2287_v37 = vpack.c.bf16 %v957_v35, %v956_v33  ;;  %v2291_v42 = vpack.c.bf16 %v959_v40, %v958_v38 }
 0x2ee   :  { %v774_v50 = vmax.f32 %v770_v44, 0.0  ;;  %v775_v51 = vmax.f32 %v2787_v46, 0.0  ;;  %v776_v34 = vmax.f32 %v2789_v48, 0.0  ;;  %v777_v32 = vmax.f32 %v2791_v49, 0.0  ;;  %v961_v44 = vld [vmem:[%s3016_s6 + $0x68] sm:$0xff]  ;;  %v962_v48 = vld [vmem:[%s3016_s6 + $0x70] sm:$0xff] }
 0x2ef   :  { %v2295_v46 = vpack.c.bf16 %v961_v44, %v960_v43  ;;  %v963_v49 = vld [vmem:[%s3016_s6 + $0x78] sm:$0xff] }
 0x2f0   :  { %v2223_v52 = vpack.c.bf16 %v775_v51, %v774_v50  ;;  %v2227_v36 = vpack.c.bf16 %v777_v32, %v776_v34 }
 0x2f2   :  { %2224 = vmatprep.subr.bf16.mxu0 %v2223_v52 }
 0x2f3   :  { %2226 = vmatpush3.bf16.msra.mxu0 %v2223_v52 }
 0x2f4   :  { %2228 = vmatprep.subr.bf16.mxu0 %v2227_v36 }
 0x2f7   :  { %2230 = vmatpush3.bf16.msra.mxu0 %v2227_v36 }
 0x2f8   :  { %2232 = vmatprep.subr.bf16.mxu0 %v2223_v52 }
 0x2fa   :  { %1908 = vmatmul.mubr.msk.f32.vlgmr.msra.gmra.mrb[8].mxu0 %vm63_vm0, %v2517_v13  ;;  %v2243_v13 = vpack.c.bf16 %v1510_v56, %v1509_v55  ;;  %v1527_v55 = vld [vmem:[%s3016_s6 + $0x120] sm:$0xff]  ;;  %v1528_v56 = vld [vmem:[%s3016_s6 + $0x128] sm:$0xff] }
 0x2fb   :  { %2234 = vmatpush3.bf16.msra.mxu0 %v2223_v52  ;;  %1910 = vmatprep.mubr.msk.f32.mxu0 %vm63_vm0, %v2527_v15  ;;  %v1511_v15 = vld [vmem:[%s3016_s6 + $0xa0] sm:$0xff]  ;;  %v1525_v52 = vld [vmem:[%s3016_s6 + $0x110] sm:$0xff] }
 0x2fc   :  { %2236 = vmatprep.subr.bf16.mxu0 %v2227_v36 }
 0x2fe   :  { %1911 = vmatmul.mubr.msk.f32.gmra.mrb[10].mxu0 %vm63_vm0, %v2549_v20  ;;  %v2247_v20 = vpack.c.bf16 %v1512_v57, %v1511_v15  ;;  %v2311_v15 = vpack.c.bf16 %v1528_v56, %v1527_v55 }
 0x2ff   :  { %2238 = vmatpush3.bf16.msra.mxu0 %v2227_v36  ;;  %1921 = vmatprep.mubr.msk.f32.mxu0 %vm63_vm0, %v2498_v7  ;;  %v1513_v7 = vld [vmem:[%s3016_s6 + $0xb0] sm:$0xff]  ;;  %v1526_v36 = vld [vmem:[%s3016_s6 + $0x118] sm:$0xff] }
 0x300   :  { %2240 = vmatprep.subr.bf16.mxu0 %v2239_v54 }
 0x302   :  { %1922 = vmatmul.mubr.msk.f32.vlgmr.msra.gmra.mrb[12].mxu0 %vm63_vm0, %v2522_v14  ;;  %v2251_v14 = vpack.c.bf16 %v1514_v58, %v1513_v7  ;;  %v1530_v7 = vld [vmem:[%s3016_s6 + $0x138] sm:$0xff] }
 0x303   :  { %2242 = vmatpush3.bf16.msra.mxu0 %v2239_v54  ;;  %1924 = vmatprep.mubr.msk.f32.mxu0 %vm63_vm0, %v2532_v16  ;;  %v1515_v16 = vld [vmem:[%s3016_s6 + $0xc0] sm:$0xff]  ;;  %v2307_v54 = vpack.c.bf16 %v1526_v36, %v1525_v52 }
 0x304   :  { %2244 = vmatprep.subr.bf16.mxu0 %v2243_v13  ;;  %v2255_v60 = vpack.c.bf16 %v1516_v59, %v1515_v16  ;;  %v1531_v59 = vld [vmem:[%s3016_s6 + $0x140] sm:$0xff] }
 0x306   :  { %1925 = vmatmul.mubr.msk.f32.gmra.mrb[14].mxu0 %vm63_vm0, %v2556_v21  ;;  %v1518_v21 = vld [vmem:[%s3016_s6 + $0xd8] sm:$0xff] }
 0x307   :  { %2246 = vmatpush3.bf16.msra.mxu0 %v2243_v13  ;;  %1959 = vmatprep.mubr.f32.mxu0 %v774_v50  ;;  %v2259_v62 = vpack.c.bf16 %v1518_v21, %v1517_v61  ;;  %v2299_v50 = vpack.c.bf16 %v963_v49, %v962_v48 }
 0x308   :  { %2248 = vmatprep.subr.bf16.mxu0 %v2247_v20 }
 0x30b   :  { %2250 = vmatpush3.bf16.msra.mxu0 %v2247_v20  ;;  %v1529_v20 = vld [vmem:[%s3016_s6 + $0x130] sm:$0xff] }
 0x30c   :  { %2252 = vmatprep.subr.bf16.mxu0 %v2251_v14 }
 0x30f   :  { %2254 = vmatpush3.bf16.msra.mxu0 %v2251_v14  ;;  %v2315_v14 = vpack.c.bf16 %v1530_v7, %v1529_v20 }
 0x310   :  { %2256 = vmatprep.subr.bf16.mxu0 %v2255_v60 }
 0x313   :  { %2258 = vmatpush3.bf16.msra.mxu0 %v2255_v60  ;;  %v1532_v60 = vld [vmem:[%s3016_s6 + $0x148] sm:$0xff] }
 0x314   :  { %2260 = vmatprep.subr.bf16.mxu0 %v2259_v62  ;;  %v2319_v21 = vpack.c.bf16 %v1532_v60, %v1531_v59 }
 0x317   :  { %2262 = vmatpush3.bf16.msra.mxu0 %v2259_v62 }
 0x318   :  { %2264 = vmatprep.subr.bf16.mxu0 %v2263_v1 }
 0x31b   :  { %2266 = vmatpush3.bf16.msra.mxu0 %v2263_v1  ;;  %v2323_v1 = vpack.c.bf16 %v1534_v0, %v1533_v63 }
 0x31c   :  { %2268 = vmatprep.subr.bf16.mxu0 %v2267_v6 }
 0x31f   :  { %2270 = vmatpush3.bf16.msra.mxu0 %v2267_v6  ;;  %v2327_v6 = vpack.c.bf16 %v1536_v4, %v1535_v2 }
 0x320   :  { %2272 = vmatprep.subr.bf16.mxu0 %v2271_v10 }
 0x322   :  { %1960 = vmatmul.mubr.f32.vlgmr.msra.gmra.mrb[16].mxu0 %v775_v51  ;;  %v1523_v51 = vld [vmem:[%s3016_s6 + $0x100] sm:$0xff] }
 0x323   :  { %1962 = vmatprep.mubr.f32.mxu0 %v776_v34  ;;  %2274 = vmatpush3.bf16.msra.mxu0 %v2271_v10  ;;  %v1524_v34 = vld [vmem:[%s3016_s6 + $0x108] sm:$0xff]  ;;  %v2331_v10 = vpack.c.bf16 %v1538_v8, %v1537_v5 }
 0x324   :  { %2276 = vmatprep.subr.bf16.mxu0 %v2275_v17 }
 0x326   :  { %1963 = vmatmul.mubr.f32.gmra.mrb[18].mxu0 %v777_v32  ;;  %v2303_v32 = vpack.c.bf16 %v1524_v34, %v1523_v51 }
 0x327   :  { %2278 = vmatpush3.bf16.msra.mxu0 %v2275_v17 }
 0x328   :  { %2280 = vmatprep.subr.bf16.mxu0 %v2279_v25 }
 0x32b   :  { %2282 = vmatpush3.bf16.msra.mxu0 %v2279_v25 }
 0x32c   :  { %2284 = vmatprep.subr.bf16.mxu0 %v2283_v31 }
 0x32f   :  { %2286 = vmatpush3.bf16.msra.mxu0 %v2283_v31 }
 0x330   :  { %2288 = vmatprep.subr.bf16.mxu0 %v2287_v37 }
 0x333   :  { %2290 = vmatpush3.bf16.msra.mxu0 %v2287_v37 }
 0x334   :  { %2292 = vmatprep.subr.bf16.mxu0 %v2291_v42 }
 0x337   :  { %2294 = vmatpush3.bf16.msra.mxu0 %v2291_v42 }
 0x338   :  { %2296 = vmatprep.subr.bf16.mxu0 %v2295_v46 }
 0x33b   :  { %2298 = vmatpush3.bf16.msra.mxu0 %v2295_v46 }
 0x33c   :  { %2300 = vmatprep.subr.bf16.mxu0 %v2299_v50 }
 0x33f   :  { %2302 = vmatpush3.bf16.msra.mxu0 %v2299_v50 }
 0x340   :  { %2304 = vmatprep.subr.bf16.mxu0 %v2303_v32 }
 0x3cd   :  { %v1909_v39 = vpop.f32.mrb[8].mxu0 }
 0x3ce   :  { %v844_v53 = vpop.f32.mrb[9].mxu0 }
 0x3cf   :  { %1997 = vmatprep.mubr.f32.mxu0 %v844_v53 }
 0x3d0   :  { %1998 = vmatmul.mubr.f32.vlgmr.msra.gmra.mrb[16].mxu0 %v1909_v39 }
 0x3d1   :  { %2306 = vmatpush3.bf16.msra.mxu0 %v2303_v32  ;;  %v1912_v13 = vpop.f32.mrb[10].mxu0 }
 0x3d2   :  { %2308 = vmatprep.subr.bf16.mxu0 %v2307_v54  ;;  %v854_v57 = vpop.f32.mrb[11].mxu0 }
 0x3d3   :  { %2000 = vmatprep.mubr.f32.mxu0 %v854_v57 }
 0x3d4   :  { %2001 = vmatmul.mubr.f32.gmra.mrb[18].mxu0 %v1912_v13 }
 0x3d5   :  { %2310 = vmatpush3.bf16.msra.mxu0 %v2307_v54  ;;  %v1923_v58 = vpop.f32.mrb[12].mxu0 }
 0x3d6   :  { %2312 = vmatprep.subr.bf16.mxu0 %v2311_v15  ;;  %v929_v16 = vpop.f32.mrb[13].mxu0 }
 0x3d7   :  { %2035 = vmatprep.mubr.f32.mxu0 %v929_v16 }
 0x3d9   :  { %2314 = vmatpush3.bf16.msra.mxu0 %v2311_v15  ;;  %v1926_v61 = vpop.f32.mrb[14].mxu0 }
 0x3da   :  { %2316 = vmatprep.subr.bf16.mxu0 %v2315_v14  ;;  %v939_v62 = vpop.f32.mrb[15].mxu0 }
 0x3dd   :  { %2318 = vmatpush3.bf16.msra.mxu0 %v2315_v14 }
 0x3de   :  { %2320 = vmatprep.subr.bf16.mxu0 %v2319_v21 }
 0x3e1   :  { %2322 = vmatpush3.bf16.msra.mxu0 %v2319_v21 }
 0x3e2   :  { %2324 = vmatprep.subr.bf16.mxu0 %v2323_v1 }
 0x3e5   :  { %2326 = vmatpush3.bf16.msra.mxu0 %v2323_v1 }
 0x3e6   :  { %2328 = vmatprep.subr.bf16.mxu0 %v2327_v6 }
 0x3e9   :  { %2330 = vmatpush3.bf16.msra.mxu0 %v2327_v6 }
 0x3ea   :  { %2332 = vmatprep.subr.bf16.mxu0 %v2331_v10 }
 0x3ed   :  { %2334 = vmatpush3.bf16.msra.mxu0 %v2331_v10 }
 0x3f0   :  { %2036 = vmatmul.mubr.f32.vlgmr.msra.gmra.mrb[16].mxu0 %v1923_v58 }
 0x3f1   :  { %2038 = vmatprep.mubr.f32.mxu0 %v939_v62 }
 0x3f4   :  { %2039 = vmatmul.mubr.f32.gmra.mrb[18].mxu0 %v1926_v61 }
 0x4c3   :  { %v2966_v11 = vpop.f32.mrb[16].mxu0 }
 0x4c4   :  { %v1267_v12 = vmul.f32 %v2966_v11, %v2966_v11  ;;  %v1234_v17 = vpop.f32.mrb[17].mxu0 }
 0x4c5   :  { %v1257_v19 = vadd.f32 %v2966_v11, %v1234_v17  ;;  %v1266_v22 = vmul.f32 %v1234_v17, %v1234_v17 }
 0x4c7   :  { %v1270_v25 = vadd.f32 %v1267_v12, %v1266_v22  ;;  %v2040_v27 = vpop.f32.mrb[18].mxu0 }
 0x4c8   :  { %v1244_v28 = vpop.f32.mrb[19].mxu0  ;;  %v1269_v35 = vmul.f32 %v2040_v27, %v2040_v27 }
 0x4c9   :  { %v1258_v31 = vadd.f32 %v1257_v19, %v1244_v28  ;;  %v1268_v33 = vmul.f32 %v1244_v28, %v1244_v28 }
 0x4cb   :  { %v1259_v37 = vadd.f32 %v2040_v27, %v1258_v31  ;;  %v1271_v38 = vadd.f32 %v1270_v25, %v1268_v33 }
 0x4cd   :  { %v1260_v40 = vrot.slane %v1259_v37, 4  ;;  %v1272_v42 = vadd.f32 %v1271_v38, %v1269_v35 }
 0x4cf   :  { %v1261_v43 = vadd.f32 %v1260_v40, %v1259_v37  ;;  %v1273_v50 = vrot.slane %v1272_v42, 4 }
 0x4d1   :  { %v1262_v44 = vrot.slane %v1261_v43, 2  ;;  %v1274_v51 = vadd.f32 %v1273_v50, %v1272_v42 }
 0x4d3   :  { %v1263_v46 = vadd.f32 %v1262_v44, %v1261_v43 }
 0x4d5   :  { %v1264_v48 = vrot.slane %v1263_v46, 1 }
 0x4d7   :  { %v1265_v49 = vadd.f32 %v1264_v48, %v1263_v46 }
 0x4d9   :  { %2074 = vmatmul.mubr.f32.vlgmr.msra.gmra.mrb[12].mxu1 %v1265_v49 }
 0x4da   :  { %2361 = vmatpush3.bf16.msra.mxu1 %v2616_v45  ;;  %2108 = vmatprep.mubr.msk.f32.mxu1 %vm2407_vm2, %v2408_v30  ;;  %v1275_v45 = vrot.slane %v1274_v51, 2 }
 0x4db   :  { %2362 = vmatprep.subr.bf16.mxu1 %v2406_v41 }
 0x4de   :  { %2364 = vmatpush3.bf16.msra.mxu1 %v2622_v47  ;;  %v1276_v47 = vadd.f32 %v1275_v45, %v1274_v51 }
 0x4df   :  { %2365 = vmatprep.subr.bf16.mxu1 %v2406_v41 }
 0x4e2   :  { %2367 = vmatpush3.bf16.msra.mxu1 %v2661_v3  ;;  %v1277_v3 = vrot.slane %v1276_v47, 1 }
 0x4e3   :  { %2368 = vmatprep.subr.bf16.mxu1 %v2406_v41 }
 0x4e6   :  { %2370 = vmatpush3.bf16.msra.mxu1 %v2671_v9  ;;  %v1278_v9 = vadd.f32 %v1277_v3, %v1276_v47 }
 0x4e7   :  { %2371 = vmatprep.subr.bf16.mxu1 %v2406_v41 }
 0x4ea   :  { %2373 = vmatpush3.bf16.msra.mxu1 %v2681_v18 }
 0x4eb   :  { %2374 = vmatprep.subr.bf16.mxu1 %v2406_v41 }
 0x4ee   :  { %2376 = vmatpush3.bf16.msra.mxu1 %v2691_v23 }
 0x4ef   :  { %2377 = vmatprep.subr.bf16.mxu1 %v2406_v41 }
 0x4f2   :  { %2379 = vmatpush3.bf16.msra.mxu1 %v2701_v26 }
 0x4f3   :  { %2380 = vmatprep.subr.bf16.mxu1 %v2406_v41  ;;  %v1424_v41 = vld [vmem:[%s3017_s7] sm:$0x1] }
 0x4f6   :  { %2382 = vmatpush3.bf16.msra.mxu1 %v2711_v29  ;;  %v1428_v29 = vld [vmem:[%s3018_s8] sm:$0x1] }
 0x4f9   :  { %2109 = vmatmul.mubr.f32.vlgmr.msra.gmra.mrb[14].mxu1 %v1278_v9 }
 0x5ac   :  { %v1345_v30 = vpop.f32.mrb[12].mxu1 }
 0x5ad   :  { %v2075_v34 = vpop.f32.mrb[13].mxu1  ;;  %v1349_v18 = vmul.f32 0.001953125, %v1345_v30 }
 0x5af   :  { %v1421_v52 = vmul.f32 %v1349_v18, %v1349_v18 }
 0x5cc   :  { %v1416_v32 = vpop.f32.mrb[14].mxu1 }
 0x5cd   :  { %v1420_v36 = vmul.f32 0.001953125, %v1416_v32  ;;  %v2110_v39 = vpop.f32.mrb[15].mxu1 }
 0x5cf   :  { %v1422_v23 = vsub.f32 %v1420_v36, %v1421_v52 }
 0x5d1   :  { %v1423_v53 = vmax.f32 %v1422_v23, 0.0 }
 0x5d3   :  { %v1425_v54 = vadd.f32 1e-05, %v1423_v53 }
 0x5d5   :  { %2404 = vrsqrt.f32 %v1425_v54 }
 0x5df   :  { %v2405_v26 = vpop.eup %2404 }
 0x5e0   :  { %v1427_v55 = vmul.f32 %v2405_v26, %v1424_v41 }
 0x5e2   :  { %v1429_v56 = vmul.f32 %v1427_v55, %v1349_v18  ;;  %v1435_v13 = vrot.slane %v1427_v55, %v2776_v24 }
 0x5e4   :  { %v1430_v15 = vsub.f32 %v1428_v29, %v1429_v56  ;;  %v1437_v57 = vmul.f32 %v1435_v13, %v1234_v17  ;;  %v1438_v20 = vmul.f32 %v2966_v11, %v1435_v13  ;;  %v1439_v7 = vmul.f32 %v1435_v13, %v1244_v28 }
 0x5e5   :  { %v1440_v58 = vmul.f32 %v2040_v27, %v1435_v13 }
 0x5e6   :  { %v1445_v14 = vrot.slane %v1430_v15, %v2776_v24 }
 0x5e8   :  { %v1447_v16 = vadd.f32 %v1445_v14, %v1437_v57  ;;  %v1448_v59 = vadd.f32 %v1445_v14, %v1438_v20  ;;  %v1449_v60 = vadd.f32 %v1445_v14, %v1439_v7  ;;  %v1450_v61 = vadd.f32 %v1445_v14, %v1440_v58 }
 0x5ea   :  { %v1451_v21 = vmax.f32 %v1447_v16, 0.0  ;;  %v1452_v62 = vmax.f32 %v1448_v59, 0.0  ;;  %v1453_v63 = vmax.f32 %v1449_v60, 0.0  ;;  %v1454_v0 = vmax.f32 %v1450_v61, 0.0 }
 0x5ec   :  { %1455 = vst [vmem:[%s3019_s10] sm:$0xff] %v1451_v21  ;;  %1456 = vst [vmem:[%s3019_s10 + $0x8] sm:$0xff] %v1452_v62 }
 0x5ed   :  { %1457 = vst [vmem:[%s3019_s10 + $0x10] sm:$0xff] %v1453_v63  ;;  %1458 = vst [vmem:[%s3019_s10 + $0x18] sm:$0xff] %v1454_v0 }

</bundles_post_ra>
